<compile_context>
chip_gen: v5e
topology: v5e:2x2
jax: 0.10.0
libtpu: 0.0.40
codegen_flags: <defaults>
</compile_context>

<pallas_src>
import jax
import jax.numpy as jnp
from jax.experimental import pallas as pl
from jax.experimental.pallas import tpu as pltpu


def _round_up(x: int, m: int) -> int:
    return ((x + m - 1) // m) * m


# ----------------------------- Pallas kernel --------------------------------
def cls_head_kernel(cls_ref, w_ref, b_ref, out_ref):
    """Linear on the CLS token followed by row-wise softmax (lane-dense C).

    cls_ref : [TB, H]      f32   CLS hidden states for this batch tile
    w_ref   : [H, C_pad]   bf16  fc weight, class dim zero-padded to 128 lanes
    b_ref   : [1, C_pad]   f32   fc bias; padded lanes hold -1e30 (masked out)
    out_ref : [TB, C_pad]  f32   softmax probabilities (padded lanes -> 0)
    """
    # Cast only the CLS tile (inside the kernel) for the MXU fast path;
    # accumulate in f32.  Bias add puts padded class lanes at -1e30.
    cls = cls_ref[...].astype(jnp.bfloat16)
    logits = jnp.dot(cls, w_ref[...],
                     preferred_element_type=jnp.float32) + b_ref[...]
    # Numerically-stable softmax over the (full-vreg, 128-lane) class axis.
    m = jnp.max(logits, axis=-1, keepdims=True)
    e = jnp.exp(logits - m)                       # exp(-1e30 - m) underflows to 0
    denom = jnp.sum(e, axis=-1, keepdims=True)
    out_ref[...] = e / denom                      # exact division: kernel is
    #                                               DMA/launch-bound, so this is free
    #                                               and rows sum to 1.


def cls_head(features, w, b):
    """softmax(features[:, 0, :] @ w + b) in one Pallas call.

    features : [B, S, H] float32 backbone last_hidden_state
    w        : [H, C]    float32
    b        : [1, C]    float32
    returns  : [B, C]    float32 softmax probabilities
    """
    B, S, H = features.shape
    C = w.shape[-1]
    LANE, SUBLANE = 128, 8

    C_pad = _round_up(C, LANE)            # lane-dense output / softmax reductions

    # Batch tile: >= 2 tiles once B >= 16 (feeds both v7x TensorCores), tile
    # capped at 512 rows for very large B (amortises per-step overhead on v5e,
    # per-tile VMEM stays tiny even at H ~ 1k).
    if B >= 16:
        TB = min(512, _round_up(pl.cdiv(B, 2), SUBLANE))
    else:
        TB = _round_up(max(B, 1), SUBLANE)
    B_pad = _round_up(B, TB)
    grid = (B_pad // TB,)

    # Weight / bias: class dim padded to 128 lanes.  Padded class lanes get a
    # very negative f32 bias so exp() underflows to exactly 0 and the softmax
    # denominator only sees the real C classes (sentinel must stay f32).
    w_p = jnp.pad(w.astype(jnp.bfloat16), ((0, 0), (0, C_pad - C)))
    b_p = jnp.pad(b.reshape(1, C).astype(jnp.float32),
                  ((0, 0), (0, C_pad - C)), constant_values=-1e30)

    # --- CLS delivery: never touch the full [B, S, H] tensor in the wrapper.
    row_bytes = H * features.dtype.itemsize
    use_fused = (row_bytes >= 1024) and (B_pad == B)
    if use_fused:
        # Realistic H (>= 1 KiB/row): fused CLS extraction -- only seq position
        # 0 of each batch tile is DMA'd from HBM; the seq dim is squeezed out
        # of the kernel ref.  No wrapper-side cast/pad of the 3-D tensor.
        cls_operand = features
        cls_spec = pl.BlockSpec((TB, pl.Squeezed(), H), lambda i: (i, 0, 0))
    else:
        # Small H (toy shapes) or B not a tile multiple: slice a contiguous
        # [B, H] CLS slab in the wrapper (cost ~ B*H, ~S x cheaper than any
        # full-tensor pass) and pad only that 2-D slab for batch alignment.
        cls2d = features[:, 0, :]
        if B_pad != B:
            cls2d = jnp.pad(cls2d, ((0, B_pad - B), (0, 0)))
        cls_operand = cls2d
        cls_spec = pl.BlockSpec((TB, H), lambda i: (i, 0))

    out = pl.pallas_call(
        cls_head_kernel,
        out_shape=jax.ShapeDtypeStruct((B_pad, C_pad), jnp.float32),
        grid=grid,
        in_specs=[
            cls_spec,
            # Weight / bias resident across the (parallel) batch-tile axis.
            pl.BlockSpec((H, C_pad), lambda i: (0, 0)),
            pl.BlockSpec((1, C_pad), lambda i: (0, 0)),
        ],
        out_specs=pl.BlockSpec((TB, C_pad), lambda i: (i, 0)),
        compiler_params=pltpu.CompilerParams(
            dimension_semantics=("parallel",)),
    )(cls_operand, w_p, b_p)

    # Padded batch rows / class lanes are meaningless by design -> slice off.
    return out[:B, :C]


# --------------------------- synthetic backbone ------------------------------
def synthetic_backbone(input_ids, attention_mask, emb_table):
    """Deterministic stand-in for AutoModel(...).last_hidden_state -> [B, S, H].

    Masked positions are zeroed so attention_mask participates (the real
    backbone uses it in attention)."""
    # TODO(synk): the pretrained HF AutoModel encoder (DeBERTa-style) is not
    # translated here; a deterministic embedding lookup stands in for it.
    feats = emb_table[input_ids]                                   # [B, S, H]
    return feats * attention_mask[..., None].astype(feats.dtype)


# --------------------------------- model -------------------------------------
def custom_model_forward(input_ids, attention_mask, params):
    features = synthetic_backbone(input_ids, attention_mask, params["emb"])  # [B,S,H]
    dropped = features                              # nn.Dropout is identity in eval
    # CLS slice + Linear + softmax run inside cls_head's Pallas kernel.
    return cls_head(dropped, params["fc_w"], params["fc_b"])       # [B, C]


# ----------------------------------- main -------------------------------------
if __name__ == "__main__":
    B, S, H, C, VOCAB = 2, 8, 32, 26, 128   # 26 labels = NVIDIA domain classifier

    key = jax.random.PRNGKey(0)
    k_emb, k_w, k_b, k_ids = jax.random.split(key, 4)

    params = {
        "emb":  jax.random.normal(k_emb, (VOCAB, H), dtype=jnp.float32) * 0.02,
        "fc_w": jax.random.normal(k_w,   (H, C),     dtype=jnp.float32) * 0.02,
        "fc_b": jax.random.normal(k_b,   (1, C),     dtype=jnp.float32) * 0.02,
    }

    input_ids = jax.random.randint(k_ids, (B, S), 0, VOCAB, dtype=jnp.int32)
    attention_mask = jnp.ones((B, S), dtype=jnp.int32).at[1, S // 2:].set(0)

    fwd = jax.jit(custom_model_forward)
    probs = jax.block_until_ready(fwd(input_ids, attention_mask, params))

    # Pure-JAX reference (same bf16 matmul precision as the kernel).
    feats_ref = synthetic_backbone(input_ids, attention_mask, params["emb"])
    cls_tok = feats_ref[:, 0, :].astype(jnp.bfloat16)
    logits_ref = jnp.dot(cls_tok, params["fc_w"].astype(jnp.bfloat16),
                         preferred_element_type=jnp.float32) + params["fc_b"]
    ref = jax.nn.softmax(logits_ref, axis=-1)

    assert probs.shape == (B, C)
    # Exact division in the kernel -> rows sum to 1 to float precision.
    assert bool(jnp.allclose(jnp.sum(probs, axis=1), 1.0, atol=1e-5))
    assert bool(jnp.allclose(probs, ref, atol=2e-3))

    print("KERNEL_OK")
</pallas_src>

<mosaic_0001>
module attributes {stable_mosaic.version = 11 : i64} {
  func.func @cls_head_kernel(%arg0: i32, %arg1: memref<8x32xf32, #tpu.memory_space<vmem>>, %arg2: memref<32x128xbf16, #tpu.memory_space<vmem>>, %arg3: memref<1x128xf32, #tpu.memory_space<vmem>>, %arg4: memref<8x128xf32, #tpu.memory_space<vmem>>) attributes {dimension_semantics = [#tpu.dimension_semantics<parallel>], iteration_bounds = array<i64: 1>, scalar_prefetch = 0 : i64, scratch_operands = 0 : i64, tpu.core_type = #tpu.core_type<tc>, window_params = [{transform_indices = @transform_0, window_bounds = array<i64: 8, 32>}, {pipeline_mode = #tpu.pipeline_mode<synchronous>, transform_indices = @transform_1, window_bounds = array<i64: 32, 128>}, {pipeline_mode = #tpu.pipeline_mode<synchronous>, transform_indices = @transform_2, window_bounds = array<i64: 1, 128>}, {transform_indices = @transform_3, window_bounds = array<i64: 8, 128>}]} {
    %c0 = arith.constant 0 : index
    %c0_0 = arith.constant 0 : index
    %0 = vector.load %arg1[%c0, %c0_0] : memref<8x32xf32, #tpu.memory_space<vmem>>, vector<8x32xf32>
    %1 = arith.truncf %0 : vector<8x32xf32> to vector<8x32xbf16>
    %c0_1 = arith.constant 0 : index
    %c0_2 = arith.constant 0 : index
    %2 = vector.load %arg2[%c0_1, %c0_2] : memref<32x128xbf16, #tpu.memory_space<vmem>>, vector<32x128xbf16>
    %cst = arith.constant dense<0.000000e+00> : vector<8x128xf32>
    %3 = tpu.matmul %1, %2, %cst {dimension_numbers = #tpu.dot_dimension_numbers<[1], [0], [0], [1], [0, 0, 1, 1], [], []>} : vector<8x32xbf16>, vector<32x128xbf16>, vector<8x128xf32> -> vector<8x128xf32>
    %c0_3 = arith.constant 0 : index
    %c0_4 = arith.constant 0 : index
    %4 = vector.load %arg3[%c0_3, %c0_4] : memref<1x128xf32, #tpu.memory_space<vmem>>, vector<1x128xf32>
    %5 = vector.broadcast %4 : vector<1x128xf32> to vector<8x128xf32>
    %6 = arith.addf %3, %5 : vector<8x128xf32>
    %cst_5 = arith.constant dense<0xFF800000> : vector<8xf32>
    %7 = vector.multi_reduction <maximumf>, %6, %cst_5 [1] : vector<8x128xf32> to vector<8xf32>
    %8 = vector.shape_cast %7 : vector<8xf32> to vector<8x1xf32>
    %9 = vector.broadcast %8 : vector<8x1xf32> to vector<8x128xf32>
    %10 = arith.subf %6, %9 : vector<8x128xf32>
    %11 = math.exp %10 : vector<8x128xf32>
    %cst_6 = arith.constant dense<0.000000e+00> : vector<8xf32>
    %12 = vector.multi_reduction <add>, %11, %cst_6 [1] : vector<8x128xf32> to vector<8xf32>
    %13 = vector.shape_cast %12 : vector<8xf32> to vector<8x1xf32>
    %14 = vector.broadcast %13 : vector<8x1xf32> to vector<8x128xf32>
    %15 = arith.divf %11, %14 : vector<8x128xf32>
    %c0_7 = arith.constant 0 : index
    %c0_8 = arith.constant 0 : index
    %16 = vector.load %arg4[%c0_7, %c0_8] : memref<8x128xf32, #tpu.memory_space<vmem>>, vector<8x128xf32>
    tpu.vector_store %arg4[%c0_7, %c0_8], %15 {strides = array<i32>} : memref<8x128xf32, #tpu.memory_space<vmem>>, vector<8x128xf32>,
    return
  }
  func.func @transform_0(%arg0: i32) -> (i32, i32) {
    %c0_i32 = arith.constant 0 : i32
    %c0_i32_0 = arith.constant 0 : i32
    return %arg0, %c0_i32 : i32, i32
  }
  func.func @transform_1(%arg0: i32) -> (i32, i32) {
    %c0_i32 = arith.constant 0 : i32
    %c0_i32_0 = arith.constant 0 : i32
    %c0_i32_1 = arith.constant 0 : i32
    return %c0_i32, %c0_i32_0 : i32, i32
  }
  func.func @transform_2(%arg0: i32) -> (i32, i32) {
    %c0_i32 = arith.constant 0 : i32
    %c0_i32_0 = arith.constant 0 : i32
    %c0_i32_1 = arith.constant 0 : i32
    return %c0_i32, %c0_i32_0 : i32, i32
  }
  func.func @transform_3(%arg0: i32) -> (i32, i32) {
    %c0_i32 = arith.constant 0 : i32
    %c0_i32_0 = arith.constant 0 : i32
    return %arg0, %c0_i32 : i32, i32
  }
}

</mosaic_0001>

<bundles_post_ra>
// kernel: custom_model_forward.1
= control target key start
LH: loop header
LB: loop body
LE: loop exit
PB: predicated region body
PF: predicated region fallthrough
CT: control target
= control target key end

     0   :  { %vm37_vm0 = vcmask 261120   ;;  %s132_s1 = inlined_call_operand.vmem [shape: bf16[32,128], index: 1, kind: input, shape index: {}]   ;;  %s133_s0 = inlined_call_operand.vmem [shape: f32[8,32], index: 0, kind: input, shape index: {}]   ;;  %s134_s2 = inlined_call_operand.vmem [shape: f32[1,128], index: 2, kind: input, shape index: {}]   ;;  %s135_s3 = inlined_call_operand.vmem [shape: f32[8,128], index: 3, kind: output, shape index: {}]  }
   0x1   :  { %v91_v0 = vld [vmem:[%s132_s1 + $0x8] sm:$0xff]  ;;  %v90_v1 = vld [vmem:[%s132_s1] sm:$0xff] }
   0x2   :  { %47 = vmatpush.bf16.msra.mxu0 %v91_v0  ;;  %v15_v2 = vld [vmem:[%s133_s0] sm:$0xff] }
   0x3   :  { %v16_v3 = vpack.c.bf16 %v15_v2, %v15_v2  ;;  %v92_v4 = vld [vmem:[%s134_s2] ss:$0 sm:$0xff] }
   0x6   :  { %48 = vmatpush.bf16.msra.mxu0 %v90_v1 }
   0x9   :  { %89 = vmatmul.msk.bf16.vlgmr.msra.gmra.mxu0 %vm37_vm0, %v16_v3 }
  0x86   :  { %v50_v5 = vpop.f32.mrf.mxu0 }
  0x87   :  { %v51_v6 = vadd.f32 %v92_v4, %v50_v5 }
  0x89   :  { %54 = vmax.xlane.f32.xlu0 %v51_v6 }
  0x8e   :  { %v52_v7 = vpop.f32.mrf.mxu0 }
  0xfc   :  { %v55_v8 = vpop.xlane.xlu0 %54 }
  0xfd   :  { %v56_v9 = vsub.f32 %v51_v6, %v55_v8 }
  0xff   :  { %v57_v10 = vmul.f32 1.442695, %v56_v9 }
 0x101   :  { %93 = vpow2.f32 %v57_v10 }
 0x107   :  { %v94_v11 = vpop.eup %93 }
 0x108   :  { %59 = vadd.xlane.f32.xlu0 %v94_v11 }
 0x17b   :  { %v60_v12 = vpop.xlane.xlu0 %59 }
 0x17c   :  { %95 = vrcp.f32 %v60_v12  ;;  %v72_v16 = vand.u32 2147483648, %v60_v12  ;;  %v70_v18 = vand.u32 2147483647, %v60_v12  ;;  %vm66_vm2 = vweird.f32 %v60_v12 }
 0x17e   :  { %v73_v20 = vor.u32 1.1754944e-38, %v72_v16  ;;  %vm71_vm4 = vcmp.eq.f32.partialorder %v70_v18, 8.507059e+37 }
 0x182   :  { %v96_v13 = vpop.eup %95 }
 0x183   :  { %v62_v14 = vmul.f32 %v96_v13, %v60_v12  ;;  %vm67_vm1 = vweird.f32 %v96_v13 }
 0x184   :  { %vm68_vm3 = vmor %vm66_vm2, %vm67_vm1 }
 0x185   :  { %v63_v15 = vsub.f32 1.0, %v62_v14 }
 0x187   :  { %v64_v17 = vmul.f32 %v96_v13, %v63_v15 }
 0x189   :  { %v65_v19 = vadd.f32 %v96_v13, %v64_v17 }
 0x18b   :  { %v69_v21 = vsel %vm68_vm3, %v96_v13, %v65_v19 }
 0x18c   :  { %v74_v22 = vsel %vm71_vm4, %v73_v20, %v69_v21 }
 0x18d   :  { %v75_v23 = vmul.f32 %v94_v11, %v74_v22 }
 0x18f   :  { %76 = vst [vmem:[%s135_s3] sm:$0xff] %v75_v23 }

</bundles_post_ra>
